<compile_context>
chip_gen: v7x
topology: tpu7x:2x2x1
jax: 0.10.0
libtpu: 0.0.40
codegen_flags: <defaults>
</compile_context>

<pallas_src>
import functools
import math

import jax
import jax.numpy as jnp
import numpy as np
from jax import lax
from jax.experimental import pallas as pl
from jax.experimental.pallas import tpu as pltpu


def _const_spec(a):
    nd = a.ndim
    return pl.BlockSpec(a.shape, lambda *_: (0,) * nd)


def _pool_upsample_matrices(h, w):
    """0.25-valued 2x2 avg-pool matrix (HW, HpWp) and 0/1 nearest-upsample (HpWp, HW)."""
    hp, wp = h // 2, w // 2
    pool = np.zeros((h * w, hp * wp), np.float32)
    for i in range(h):
        for j in range(w):
            pool[i * w + j, (i // 2) * wp + (j // 2)] = 0.25
    up = (pool > 0).astype(np.float32).T
    # 0.25 / 1.0 / 0.0 are exact in bf16: half the constant VMEM footprint.
    return jnp.asarray(pool, jnp.bfloat16), jnp.asarray(up, jnp.bfloat16)


def _shift_zero(v, s, n):
    """w[:, p] = v[:, p + s] if 0 <= p + s < n else 0  (static s, in registers)."""
    if s == 0:
        return v
    c = v.shape[0]
    z = jnp.zeros((c, abs(s)), v.dtype)
    if s > 0:
        return jnp.concatenate([v[:, s:], z], axis=1)
    return jnp.concatenate([z, v[:, :n + s]], axis=1)


# ------------------------------ fused kernel --------------------------------

def _ghost_kernel(*refs, H, W, c1, c2, init_c, new_c, mult, dw_k, dfc_k, dfc):
    HW = H * W
    Hp, Wp = H // 2, W // 2
    HpWp = Hp * Wp
    use_roll = (HW % 128 == 0)   # XLU lane rotate wants a 128-multiple lane axis

    if dfc:
        (x_ref, pw_w_ref, pw_b_ref, dw_w_ref, dw_b_ref,
         dpw_w_ref, dpw_b_ref, dh_w_ref, dh_b_ref, dv_w_ref, dv_b_ref,
         pool_ref, up_ref, o_ref) = refs
    else:
        (x_ref, pw_w_ref, pw_b_ref, dw_w_ref, dw_b_ref, o_ref) = refs

    x = x_ref[...].astype(jnp.float32)                       # (c1, HW)

    # ---- primary_conv: 1x1 conv (BN scale folded) + bias + ReLU on the MXU ----
    x1 = jnp.maximum(
        jnp.dot(pw_w_ref[...], x, preferred_element_type=jnp.float32)
        + pw_b_ref[...], 0.0)                                 # (init_c, HW)

    # ---- cheap_operation: grouped dw_k x dw_k depthwise conv + bias + ReLU ----
    # Shifted taps are produced in registers (roll / slice+concat); boundary
    # masks are built once per image and reused across all taps.
    p_idx = lax.broadcasted_iota(jnp.int32, (1, HW), 1)
    col = p_idx % W
    r = dw_k // 2
    col_ok = {dj: jnp.logical_and(col + dj >= 0, col + dj < W)
              for dj in range(-r, r + 1) if dj != 0}
    row_ok = {di: jnp.logical_and(p_idx + di * W >= 0, p_idx + di * W < HW)
              for di in range(-r, r + 1) if di != 0}
    tap_mask = {}
    for di in range(-r, r + 1):
        for dj in range(-r, r + 1):
            m = row_ok.get(di) if use_roll else None   # _shift_zero handles rows itself
            if dj != 0:
                m = col_ok[dj] if m is None else jnp.logical_and(m, col_ok[dj])
            tap_mask[(di, dj)] = m

    x1_rep = x1 if mult == 1 else jnp.repeat(x1, mult, axis=0)   # once, in registers
    dw_w = dw_w_ref[...]                                     # (new_c, dw_k*dw_k)
    acc = jnp.zeros((new_c, HW), jnp.float32)
    for i in range(dw_k):
        for j in range(dw_k):
            di, dj = i - r, j - r
            s = di * W + dj
            if s == 0:
                patch = x1_rep
            elif use_roll:
                patch = pltpu.roll(x1_rep, (-s) % HW, axis=1)
            else:
                patch = _shift_zero(x1_rep, s, HW)
            m = tap_mask[(di, dj)]
            if m is not None:
                patch = jnp.where(m, patch, 0.0)
            acc = acc + dw_w[:, i * dw_k + j:i * dw_k + j + 1] * patch
    x2 = jnp.maximum(acc + dw_b_ref[...], 0.0)               # (new_c, HW)

    # concat + slice to c2, fully in registers
    out = jnp.concatenate([x1, x2], axis=0)[:c2, :]          # (c2, HW)

    if not dfc:
        o_ref[...] = out.astype(o_ref.dtype)                 # single unmasked store
        return

    # ---- DFC gate (quarter resolution, never touches HBM) ----
    # 2x2 avg-pool as a constant matmul (MXU, otherwise idle)
    pooled = jnp.dot(x, pool_ref[...].astype(jnp.float32),
                     preferred_element_type=jnp.float32)      # (c1, HpWp)

    # 1x1 conv c1 -> c2 (BN scale folded) + bias on the MXU
    g = jnp.dot(dpw_w_ref[...], pooled,
                preferred_element_type=jnp.float32) + dpw_b_ref[...]   # (c2, HpWp)

    rq = dfc_k // 2
    colp = lax.broadcasted_iota(jnp.int32, (1, HpWp), 1) % Wp
    colp_ok = {dj: jnp.logical_and(colp + dj >= 0, colp + dj < Wp)
               for dj in range(-rq, rq + 1) if dj != 0}

    # 1 x dfc_k horizontal depthwise conv + bias (register shifts, hoisted masks)
    dh_w = dh_w_ref[...]
    acc = jnp.zeros((c2, HpWp), jnp.float32)
    for t in range(dfc_k):
        dj = t - rq
        patch = _shift_zero(g, dj, HpWp)
        if dj != 0:
            patch = jnp.where(colp_ok[dj], patch, 0.0)
        acc = acc + dh_w[:, t:t + 1] * patch
    g = acc + dh_b_ref[...]

    # dfc_k x 1 vertical depthwise conv + bias (zero fill == valid-row mask)
    dv_w = dv_w_ref[...]
    acc = jnp.zeros((c2, HpWp), jnp.float32)
    for t in range(dfc_k):
        di = t - rq
        acc = acc + dv_w[:, t:t + 1] * _shift_zero(g, di * Wp, HpWp)
    g = acc + dv_b_ref[...]

    gate_q = jax.nn.sigmoid(g)                               # (c2, HpWp)

    # nearest 2x upsample as a 0/1 matmul (MXU)
    gate = jnp.dot(gate_q, up_ref[...].astype(jnp.float32),
                   preferred_element_type=jnp.float32)        # (c2, HW)

    o_ref[...] = (out * gate).astype(o_ref.dtype)            # single unmasked store


# --------------------------------- wrapper ----------------------------------

def ghost_module_v2_forward(x_nchw, params, *, c2, ratio=2, dw_k=3,
                            dfc=True, dfc_k=5, k=1, s=1):
    """Forward pass of GhostModuleV2 (k=1, s=1, act='relu'), NCHW in / NCHW out."""
    assert k == 1 and s == 1  # TODO(synk): k>1 / s>1 need an im2col path
    n, c1, h, w = x_nchw.shape
    assert h == w and h % 2 == 0, "DFC pool/upsample path assumes square, even spatial dims"
    hw = h * w
    hpwp = (h // 2) * (w // 2)
    init_c = math.ceil(c2 / ratio)
    mult = ratio - 1
    new_c = init_c * mult

    x_flat = x_nchw.reshape(n, c1, hw)          # free bitcast; NCHW kept end-to-end

    # Fold eval-mode BN scales into conv weights (constant transform, zero runtime cost).
    pw_w = params["pw_w"] * params["pw_scale"]
    dw_w = params["dw_w"] * params["dw_scale"]

    inputs = [x_flat, pw_w, params["pw_bias"], dw_w, params["dw_bias"]]
    if dfc:
        pool_m, up_m = _pool_upsample_matrices(h, w)
        dpw_w = params["dfc_pw_w"] * params["dfc_pw_scale"]
        dh_w = params["dfc_h_w"] * params["dfc_h_scale"]
        dv_w = params["dfc_v_w"] * params["dfc_v_scale"]
        inputs += [dpw_w, params["dfc_pw_bias"], dh_w, params["dfc_h_bias"],
                   dv_w, params["dfc_v_bias"], pool_m, up_m]

    in_specs = [pl.BlockSpec((None, c1, hw), lambda i: (i, 0, 0))]
    in_specs += [_const_spec(a) for a in inputs[1:]]

    kernel = functools.partial(
        _ghost_kernel, H=h, W=w, c1=c1, c2=c2, init_c=init_c, new_c=new_c,
        mult=mult, dw_k=dw_k, dfc_k=dfc_k, dfc=dfc)

    flops = 2 * n * hw * (c1 * init_c + dw_k * dw_k * new_c)
    transcendentals = 0
    if dfc:
        flops += 2 * n * (c1 * hw * hpwp + c1 * c2 * hpwp
                          + 2 * dfc_k * c2 * hpwp + c2 * hpwp * hw) + n * c2 * hw
        transcendentals = n * c2 * hpwp
    bytes_accessed = (4 * (n * c1 * hw + n * c2 * hw)
                      + sum(int(a.size) * a.dtype.itemsize for a in inputs[1:]))

    out_flat = pl.pallas_call(
        kernel,
        out_shape=jax.ShapeDtypeStruct((n, c2, hw), x_nchw.dtype),
        grid=(n,),
        in_specs=in_specs,
        out_specs=pl.BlockSpec((None, c2, hw), lambda i: (i, 0, 0)),
        compiler_params=pltpu.CompilerParams(
            dimension_semantics=("parallel",),
            vmem_limit_bytes=32 * 1024 * 1024),
        cost_estimate=pl.CostEstimate(flops=int(flops),
                                      transcendentals=int(transcendentals),
                                      bytes_accessed=int(bytes_accessed)),
    )(*inputs)

    return out_flat.reshape(n, c2, h, w)


# ---------------------------- parameter setup -------------------------------

def make_params(key, c1, c2, *, ratio=2, dw_k=3, dfc=True, dfc_k=5, eps=1e-5):
    init_c = math.ceil(c2 / ratio)
    new_c = init_c * (ratio - 1)
    keys = jax.random.split(key, 5)

    def bn_fold(c, off):
        # deterministic eval-mode BN stats folded to per-channel scale/bias columns
        i = jnp.arange(c, dtype=jnp.float32)
        gamma = 1.0 + 0.05 * jnp.cos(i + off)
        beta = 0.02 * jnp.sin(i + off)
        mean = 0.01 * i
        var = 1.0 + 0.1 * (i % 3)
        scale = gamma / jnp.sqrt(var + eps)
        bias = beta - mean * scale
        return scale.reshape(c, 1), bias.reshape(c, 1)

    p = {}
    p["pw_w"] = jax.random.normal(keys[0], (init_c, c1), jnp.float32) / np.sqrt(c1)
    p["pw_scale"], p["pw_bias"] = bn_fold(init_c, 0.0)
    p["dw_w"] = jax.random.normal(keys[1], (new_c, dw_k * dw_k), jnp.float32) / dw_k
    p["dw_scale"], p["dw_bias"] = bn_fold(new_c, 1.0)
    if dfc:
        p["dfc_pw_w"] = jax.random.normal(keys[2], (c2, c1), jnp.float32) / np.sqrt(c1)
        p["dfc_pw_scale"], p["dfc_pw_bias"] = bn_fold(c2, 2.0)
        p["dfc_h_w"] = jax.random.normal(keys[3], (c2, dfc_k), jnp.float32) / np.sqrt(dfc_k)
        p["dfc_h_scale"], p["dfc_h_bias"] = bn_fold(c2, 3.0)
        p["dfc_v_w"] = jax.random.normal(keys[4], (c2, dfc_k), jnp.float32) / np.sqrt(dfc_k)
        p["dfc_v_scale"], p["dfc_v_bias"] = bn_fold(c2, 4.0)
    return p


# ------------------------- pure-JAX reference (check) ------------------------

def _reference_forward(x, params, *, c2, ratio, dw_k, dfc, dfc_k):
    n, c1, h, w = x.shape
    init_c = math.ceil(c2 / ratio)
    new_c = init_c * (ratio - 1)
    dn = ("NCHW", "OIHW", "NCHW")
    hi = lax.Precision.HIGHEST

    def bn(y, sc, b):
        return y * sc.reshape(1, -1, 1, 1) + b.reshape(1, -1, 1, 1)

    y = lax.conv_general_dilated(x, params["pw_w"].reshape(init_c, c1, 1, 1),
                                 (1, 1), "VALID", dimension_numbers=dn, precision=hi)
    x1 = jnp.maximum(bn(y, params["pw_scale"], params["pw_bias"]), 0.0)

    y = lax.conv_general_dilated(
        x1, params["dw_w"].reshape(new_c, 1, dw_k, dw_k), (1, 1),
        [(dw_k // 2, dw_k // 2)] * 2, dimension_numbers=dn,
        feature_group_count=init_c, precision=hi)
    x2 = jnp.maximum(bn(y, params["dw_scale"], params["dw_bias"]), 0.0)

    out = jnp.concatenate([x1, x2], axis=1)[:, :c2]
    if not dfc:
        return out

    xp = x.reshape(n, c1, h // 2, 2, w // 2, 2).mean(axis=(3, 5))
    g = lax.conv_general_dilated(xp, params["dfc_pw_w"].reshape(c2, c1, 1, 1),
                                 (1, 1), "VALID", dimension_numbers=dn, precision=hi)
    g = bn(g, params["dfc_pw_scale"], params["dfc_pw_bias"])
    g = lax.conv_general_dilated(
        g, params["dfc_h_w"].reshape(c2, 1, 1, dfc_k), (1, 1),
        [(0, 0), (dfc_k // 2, dfc_k // 2)], dimension_numbers=dn,
        feature_group_count=c2, precision=hi)
    g = bn(g, params["dfc_h_scale"], params["dfc_h_bias"])
    g = lax.conv_general_dilated(
        g, params["dfc_v_w"].reshape(c2, 1, dfc_k, 1), (1, 1),
        [(dfc_k // 2, dfc_k // 2), (0, 0)], dimension_numbers=dn,
        feature_group_count=c2, precision=hi)
    g = bn(g, params["dfc_v_scale"], params["dfc_v_bias"])
    g = jax.nn.sigmoid(g)
    g = jnp.repeat(jnp.repeat(g, 2, axis=2), 2, axis=3)
    return out * g


# --------------------------------- main --------------------------------------

if __name__ == "__main__":
    key = jax.random.PRNGKey(0)
    N, C1, H, W = 2, 4, 16, 16
    C2 = 8                      # ratio=2 -> init=4, new=4
    kp, kx = jax.random.split(key)

    params = make_params(kp, C1, C2, ratio=2, dw_k=3, dfc=True, dfc_k=5)
    x = jax.random.normal(kx, (N, C1, H, W), jnp.float32)   # NCHW, PyTorch-style

    fwd = jax.jit(functools.partial(
        ghost_module_v2_forward, c2=C2, ratio=2, dw_k=3, dfc=True, dfc_k=5))
    out = fwd(x, params)
    jax.block_until_ready(out)

    assert out.shape == (N, C2, H, W), out.shape
    assert bool(jnp.all(jnp.isfinite(out)))

    ref = _reference_forward(x, params, c2=C2, ratio=2, dw_k=3, dfc=True, dfc_k=5)
    max_err = float(jnp.max(jnp.abs(out - ref)))
    assert max_err < 1e-2, max_err

    print("KERNEL_OK")
</pallas_src>

<mosaic_0001>
module attributes {stable_mosaic.version = 11 : i64} {
  func.func @_ghost_kernel(%arg0: i32, %arg1: memref<1x4x256xf32, #tpu.memory_space<vmem>>, %arg2: memref<4x4xf32, #tpu.memory_space<vmem>>, %arg3: memref<4x1xf32, #tpu.memory_space<vmem>>, %arg4: memref<4x9xf32, #tpu.memory_space<vmem>>, %arg5: memref<4x1xf32, #tpu.memory_space<vmem>>, %arg6: memref<8x4xf32, #tpu.memory_space<vmem>>, %arg7: memref<8x1xf32, #tpu.memory_space<vmem>>, %arg8: memref<8x5xf32, #tpu.memory_space<vmem>>, %arg9: memref<8x1xf32, #tpu.memory_space<vmem>>, %arg10: memref<8x5xf32, #tpu.memory_space<vmem>>, %arg11: memref<8x1xf32, #tpu.memory_space<vmem>>, %arg12: memref<256x64xbf16, #tpu.memory_space<vmem>>, %arg13: memref<64x256xbf16, #tpu.memory_space<vmem>>, %arg14: memref<1x8x256xf32, #tpu.memory_space<vmem>>) attributes {dimension_semantics = [#tpu.dimension_semantics<parallel>], iteration_bounds = array<i64: 2>, scalar_prefetch = 0 : i64, scratch_operands = 0 : i64, tpu.core_type = #tpu.core_type<tc>, window_params = [{transform_indices = @transform_0, window_bounds = array<i64: 1, 4, 256>}, {pipeline_mode = #tpu.pipeline_mode<synchronous>, transform_indices = @transform_1, window_bounds = array<i64: 4, 4>}, {pipeline_mode = #tpu.pipeline_mode<synchronous>, transform_indices = @transform_2, window_bounds = array<i64: 4, 1>}, {pipeline_mode = #tpu.pipeline_mode<synchronous>, transform_indices = @transform_3, window_bounds = array<i64: 4, 9>}, {pipeline_mode = #tpu.pipeline_mode<synchronous>, transform_indices = @transform_4, window_bounds = array<i64: 4, 1>}, {pipeline_mode = #tpu.pipeline_mode<synchronous>, transform_indices = @transform_5, window_bounds = array<i64: 8, 4>}, {pipeline_mode = #tpu.pipeline_mode<synchronous>, transform_indices = @transform_6, window_bounds = array<i64: 8, 1>}, {pipeline_mode = #tpu.pipeline_mode<synchronous>, transform_indices = @transform_7, window_bounds = array<i64: 8, 5>}, {pipeline_mode = #tpu.pipeline_mode<synchronous>, transform_indices = @transform_8, window_bounds = array<i64: 8, 1>}, {pipeline_mode = #tpu.pipeline_mode<synchronous>, transform_indices = @transform_9, window_bounds = array<i64: 8, 5>}, {pipeline_mode = #tpu.pipeline_mode<synchronous>, transform_indices = @transform_10, window_bounds = array<i64: 8, 1>}, {pipeline_mode = #tpu.pipeline_mode<synchronous>, transform_indices = @transform_11, window_bounds = array<i64: 256, 64>}, {pipeline_mode = #tpu.pipeline_mode<synchronous>, transform_indices = @transform_12, window_bounds = array<i64: 64, 256>}, {transform_indices = @transform_13, window_bounds = array<i64: 1, 8, 256>}]} {
    %c0 = arith.constant 0 : index
    %c0_0 = arith.constant 0 : index
    %c0_1 = arith.constant 0 : index
    %0 = vector.load %arg1[%c0, %c0_0, %c0_1] : memref<1x4x256xf32, #tpu.memory_space<vmem>>, vector<1x4x256xf32>
    %1 = vector.shape_cast %0 : vector<1x4x256xf32> to vector<4x256xf32>
    %c0_2 = arith.constant 0 : index
    %c0_3 = arith.constant 0 : index
    %2 = vector.load %arg2[%c0_2, %c0_3] : memref<4x4xf32, #tpu.memory_space<vmem>>, vector<4x4xf32>
    %cst = arith.constant dense<0.000000e+00> : vector<4x256xf32>
    %3 = tpu.matmul %2, %1, %cst {dimension_numbers = #tpu.dot_dimension_numbers<[1], [0], [0], [1], [0, 0, 1, 1], [], []>} : vector<4x4xf32>, vector<4x256xf32>, vector<4x256xf32> -> vector<4x256xf32>
    %c0_4 = arith.constant 0 : index
    %c0_5 = arith.constant 0 : index
    %4 = vector.load %arg3[%c0_4, %c0_5] : memref<4x1xf32, #tpu.memory_space<vmem>>, vector<4x1xf32>
    %5 = vector.broadcast %4 : vector<4x1xf32> to vector<4x256xf32>
    %6 = arith.addf %3, %5 : vector<4x256xf32>
    %cst_6 = arith.constant 0.000000e+00 : f32
    %7 = vector.broadcast %cst_6 : f32 to vector<4x256xf32>
    %8 = arith.maximumf %6, %7 : vector<4x256xf32>
    %9 = tpu.iota {dimensions = array<i32: 1>} : vector<1x256xi32>
    %c16_i32 = arith.constant 16 : i32
    %c0_i32 = arith.constant 0 : i32
    %10 = arith.cmpi eq, %c16_i32, %c0_i32 : i32
    %c1_i32 = arith.constant 1 : i32
    %11 = arith.select %10, %c1_i32, %c16_i32 : i32
    %12 = vector.broadcast %11 : i32 to vector<1x256xi32>
    %13 = arith.remsi %9, %12 : vector<1x256xi32>
    %c0_i32_7 = arith.constant 0 : i32
    %14 = vector.broadcast %c0_i32_7 : i32 to vector<1x256xi32>
    %15 = arith.cmpi ne, %13, %14 : vector<1x256xi32>
    %c0_i32_8 = arith.constant 0 : i32
    %16 = vector.broadcast %c0_i32_8 : i32 to vector<1x256xi32>
    %17 = arith.cmpi slt, %13, %16 : vector<1x256xi32>
    %c0_i32_9 = arith.constant 0 : i32
    %18 = arith.cmpi slt, %11, %c0_i32_9 : i32
    %19 = vector.broadcast %18 : i1 to vector<1x256xi1>
    %20 = vector.broadcast %19 : vector<1x256xi1> to vector<1x256xi1>
    %21 = arith.xori %17, %20 : vector<1x256xi1>
    %22 = arith.andi %21, %15 : vector<1x256xi1>
    %23 = vector.broadcast %11 : i32 to vector<1x256xi32>
    %24 = arith.addi %13, %23 : vector<1x256xi32>
    %25 = arith.select %22, %24, %13 : vector<1x256xi1>, vector<1x256xi32>
    %c-1_i32 = arith.constant -1 : i32
    %26 = vector.broadcast %c-1_i32 : i32 to vector<1x256xi32>
    %27 = arith.addi %25, %26 : vector<1x256xi32>
    %c0_i32_10 = arith.constant 0 : i32
    %28 = vector.broadcast %c0_i32_10 : i32 to vector<1x256xi32>
    %29 = arith.cmpi sge, %27, %28 : vector<1x256xi32>
    %c-1_i32_11 = arith.constant -1 : i32
    %30 = vector.broadcast %c-1_i32_11 : i32 to vector<1x256xi32>
    %31 = arith.addi %25, %30 : vector<1x256xi32>
    %c16_i32_12 = arith.constant 16 : i32
    %32 = vector.broadcast %c16_i32_12 : i32 to vector<1x256xi32>
    %33 = arith.cmpi slt, %31, %32 : vector<1x256xi32>
    %34 = arith.andi %29, %33 : vector<1x256xi1>
    %c1_i32_13 = arith.constant 1 : i32
    %35 = vector.broadcast %c1_i32_13 : i32 to vector<1x256xi32>
    %36 = arith.addi %25, %35 : vector<1x256xi32>
    %c0_i32_14 = arith.constant 0 : i32
    %37 = vector.broadcast %c0_i32_14 : i32 to vector<1x256xi32>
    %38 = arith.cmpi sge, %36, %37 : vector<1x256xi32>
    %c1_i32_15 = arith.constant 1 : i32
    %39 = vector.broadcast %c1_i32_15 : i32 to vector<1x256xi32>
    %40 = arith.addi %25, %39 : vector<1x256xi32>
    %c16_i32_16 = arith.constant 16 : i32
    %41 = vector.broadcast %c16_i32_16 : i32 to vector<1x256xi32>
    %42 = arith.cmpi slt, %40, %41 : vector<1x256xi32>
    %43 = arith.andi %38, %42 : vector<1x256xi1>
    %c-16_i32 = arith.constant -16 : i32
    %44 = vector.broadcast %c-16_i32 : i32 to vector<1x256xi32>
    %45 = arith.addi %9, %44 : vector<1x256xi32>
    %c0_i32_17 = arith.constant 0 : i32
    %46 = vector.broadcast %c0_i32_17 : i32 to vector<1x256xi32>
    %47 = arith.cmpi sge, %45, %46 : vector<1x256xi32>
    %c-16_i32_18 = arith.constant -16 : i32
    %48 = vector.broadcast %c-16_i32_18 : i32 to vector<1x256xi32>
    %49 = arith.addi %9, %48 : vector<1x256xi32>
    %c256_i32 = arith.constant 256 : i32
    %50 = vector.broadcast %c256_i32 : i32 to vector<1x256xi32>
    %51 = arith.cmpi slt, %49, %50 : vector<1x256xi32>
    %52 = arith.andi %47, %51 : vector<1x256xi1>
    %c16_i32_19 = arith.constant 16 : i32
    %53 = vector.broadcast %c16_i32_19 : i32 to vector<1x256xi32>
    %54 = arith.addi %9, %53 : vector<1x256xi32>
    %c0_i32_20 = arith.constant 0 : i32
    %55 = vector.broadcast %c0_i32_20 : i32 to vector<1x256xi32>
    %56 = arith.cmpi sge, %54, %55 : vector<1x256xi32>
    %c16_i32_21 = arith.constant 16 : i32
    %57 = vector.broadcast %c16_i32_21 : i32 to vector<1x256xi32>
    %58 = arith.addi %9, %57 : vector<1x256xi32>
    %c256_i32_22 = arith.constant 256 : i32
    %59 = vector.broadcast %c256_i32_22 : i32 to vector<1x256xi32>
    %60 = arith.cmpi slt, %58, %59 : vector<1x256xi32>
    %61 = arith.andi %56, %60 : vector<1x256xi1>
    %62 = arith.andi %52, %34 : vector<1x256xi1>
    %63 = arith.andi %52, %43 : vector<1x256xi1>
    %64 = arith.andi %61, %34 : vector<1x256xi1>
    %65 = arith.andi %61, %43 : vector<1x256xi1>
    %c0_23 = arith.constant 0 : index
    %c0_24 = arith.constant 0 : index
    %66 = vector.load %arg4[%c0_23, %c0_24] : memref<4x9xf32, #tpu.memory_space<vmem>>, vector<4x9xf32>
    %cst_25 = arith.constant 0.000000e+00 : f32
    %67 = vector.broadcast %cst_25 : f32 to vector<4x256xf32>
    %c17_i32 = arith.constant 17 : i32
    %68 = tpu.dynamic_rotate %8 by %c17_i32 dim 1 : vector<4x256xf32>, i32 -> vector<4x256xf32>
    %cst_26 = arith.constant 0.000000e+00 : f32
    %69 = vector.shape_cast %62 : vector<1x256xi1> to vector<1x256xi1>
    %70 = vector.broadcast %69 : vector<1x256xi1> to vector<4x256xi1>
    %71 = vector.broadcast %cst_26 : f32 to vector<4x256xf32>
    %72 = arith.select %70, %68, %71 : vector<4x256xi1>, vector<4x256xf32>
    %73 = vector.extract_strided_slice %66 {offsets = [0, 0], sizes = [4, 1], strides = [1, 1]} : vector<4x9xf32> to vector<4x1xf32>
    %74 = vector.broadcast %73 : vector<4x1xf32> to vector<4x256xf32>
    %75 = arith.mulf %74, %72 : vector<4x256xf32>
    %76 = arith.addf %67, %75 : vector<4x256xf32>
    %c16_i32_27 = arith.constant 16 : i32
    %77 = tpu.dynamic_rotate %8 by %c16_i32_27 dim 1 : vector<4x256xf32>, i32 -> vector<4x256xf32>
    %cst_28 = arith.constant 0.000000e+00 : f32
    %78 = vector.shape_cast %52 : vector<1x256xi1> to vector<1x256xi1>
    %79 = vector.broadcast %78 : vector<1x256xi1> to vector<4x256xi1>
    %80 = vector.broadcast %cst_28 : f32 to vector<4x256xf32>
    %81 = arith.select %79, %77, %80 : vector<4x256xi1>, vector<4x256xf32>
    %82 = vector.extract_strided_slice %66 {offsets = [0, 1], sizes = [4, 1], strides = [1, 1]} : vector<4x9xf32> to vector<4x1xf32>
    %83 = vector.broadcast %82 : vector<4x1xf32> to vector<4x256xf32>
    %84 = arith.mulf %83, %81 : vector<4x256xf32>
    %85 = arith.addf %76, %84 : vector<4x256xf32>
    %c15_i32 = arith.constant 15 : i32
    %86 = tpu.dynamic_rotate %8 by %c15_i32 dim 1 : vector<4x256xf32>, i32 -> vector<4x256xf32>
    %cst_29 = arith.constant 0.000000e+00 : f32
    %87 = vector.shape_cast %63 : vector<1x256xi1> to vector<1x256xi1>
    %88 = vector.broadcast %87 : vector<1x256xi1> to vector<4x256xi1>
    %89 = vector.broadcast %cst_29 : f32 to vector<4x256xf32>
    %90 = arith.select %88, %86, %89 : vector<4x256xi1>, vector<4x256xf32>
    %91 = vector.extract_strided_slice %66 {offsets = [0, 2], sizes = [4, 1], strides = [1, 1]} : vector<4x9xf32> to vector<4x1xf32>
    %92 = vector.broadcast %91 : vector<4x1xf32> to vector<4x256xf32>
    %93 = arith.mulf %92, %90 : vector<4x256xf32>
    %94 = arith.addf %85, %93 : vector<4x256xf32>
    %c1_i32_30 = arith.constant 1 : i32
    %95 = tpu.dynamic_rotate %8 by %c1_i32_30 dim 1 : vector<4x256xf32>, i32 -> vector<4x256xf32>
    %cst_31 = arith.constant 0.000000e+00 : f32
    %96 = vector.shape_cast %34 : vector<1x256xi1> to vector<1x256xi1>
    %97 = vector.broadcast %96 : vector<1x256xi1> to vector<4x256xi1>
    %98 = vector.broadcast %cst_31 : f32 to vector<4x256xf32>
    %99 = arith.select %97, %95, %98 : vector<4x256xi1>, vector<4x256xf32>
    %100 = vector.extract_strided_slice %66 {offsets = [0, 3], sizes = [4, 1], strides = [1, 1]} : vector<4x9xf32> to vector<4x1xf32>
    %101 = vector.broadcast %100 : vector<4x1xf32> to vector<4x256xf32>
    %102 = arith.mulf %101, %99 : vector<4x256xf32>
    %103 = arith.addf %94, %102 : vector<4x256xf32>
    %104 = vector.extract_strided_slice %66 {offsets = [0, 4], sizes = [4, 1], strides = [1, 1]} : vector<4x9xf32> to vector<4x1xf32>
    %105 = vector.broadcast %104 : vector<4x1xf32> to vector<4x256xf32>
    %106 = arith.mulf %105, %8 : vector<4x256xf32>
    %107 = arith.addf %103, %106 : vector<4x256xf32>
    %c255_i32 = arith.constant 255 : i32
    %108 = tpu.dynamic_rotate %8 by %c255_i32 dim 1 : vector<4x256xf32>, i32 -> vector<4x256xf32>
    %cst_32 = arith.constant 0.000000e+00 : f32
    %109 = vector.shape_cast %43 : vector<1x256xi1> to vector<1x256xi1>
    %110 = vector.broadcast %109 : vector<1x256xi1> to vector<4x256xi1>
    %111 = vector.broadcast %cst_32 : f32 to vector<4x256xf32>
    %112 = arith.select %110, %108, %111 : vector<4x256xi1>, vector<4x256xf32>
    %113 = vector.extract_strided_slice %66 {offsets = [0, 5], sizes = [4, 1], strides = [1, 1]} : vector<4x9xf32> to vector<4x1xf32>
    %114 = vector.broadcast %113 : vector<4x1xf32> to vector<4x256xf32>
    %115 = arith.mulf %114, %112 : vector<4x256xf32>
    %116 = arith.addf %107, %115 : vector<4x256xf32>
    %c241_i32 = arith.constant 241 : i32
    %117 = tpu.dynamic_rotate %8 by %c241_i32 dim 1 : vector<4x256xf32>, i32 -> vector<4x256xf32>
    %cst_33 = arith.constant 0.000000e+00 : f32
    %118 = vector.shape_cast %64 : vector<1x256xi1> to vector<1x256xi1>
    %119 = vector.broadcast %118 : vector<1x256xi1> to vector<4x256xi1>
    %120 = vector.broadcast %cst_33 : f32 to vector<4x256xf32>
    %121 = arith.select %119, %117, %120 : vector<4x256xi1>, vector<4x256xf32>
    %122 = vector.extract_strided_slice %66 {offsets = [0, 6], sizes = [4, 1], strides = [1, 1]} : vector<4x9xf32> to vector<4x1xf32>
    %123 = vector.broadcast %122 : vector<4x1xf32> to vector<4x256xf32>
    %124 = arith.mulf %123, %121 : vector<4x256xf32>
    %125 = arith.addf %116, %124 : vector<4x256xf32>
    %c240_i32 = arith.constant 240 : i32
    %126 = tpu.dynamic_rotate %8 by %c240_i32 dim 1 : vector<4x256xf32>, i32 -> vector<4x256xf32>
    %cst_34 = arith.constant 0.000000e+00 : f32
    %127 = vector.shape_cast %61 : vector<1x256xi1> to vector<1x256xi1>
    %128 = vector.broadcast %127 : vector<1x256xi1> to vector<4x256xi1>
    %129 = vector.broadcast %cst_34 : f32 to vector<4x256xf32>
    %130 = arith.select %128, %126, %129 : vector<4x256xi1>, vector<4x256xf32>
    %131 = vector.extract_strided_slice %66 {offsets = [0, 7], sizes = [4, 1], strides = [1, 1]} : vector<4x9xf32> to vector<4x1xf32>
    %132 = vector.broadcast %131 : vector<4x1xf32> to vector<4x256xf32>
    %133 = arith.mulf %132, %130 : vector<4x256xf32>
    %134 = arith.addf %125, %133 : vector<4x256xf32>
    %c239_i32 = arith.constant 239 : i32
    %135 = tpu.dynamic_rotate %8 by %c239_i32 dim 1 : vector<4x256xf32>, i32 -> vector<4x256xf32>
    %cst_35 = arith.constant 0.000000e+00 : f32
    %136 = vector.shape_cast %65 : vector<1x256xi1> to vector<1x256xi1>
    %137 = vector.broadcast %136 : vector<1x256xi1> to vector<4x256xi1>
    %138 = vector.broadcast %cst_35 : f32 to vector<4x256xf32>
    %139 = arith.select %137, %135, %138 : vector<4x256xi1>, vector<4x256xf32>
    %140 = vector.extract_strided_slice %66 {offsets = [0, 8], sizes = [4, 1], strides = [1, 1]} : vector<4x9xf32> to vector<4x1xf32>
    %141 = vector.broadcast %140 : vector<4x1xf32> to vector<4x256xf32>
    %142 = arith.mulf %141, %139 : vector<4x256xf32>
    %143 = arith.addf %134, %142 : vector<4x256xf32>
    %c0_36 = arith.constant 0 : index
    %c0_37 = arith.constant 0 : index
    %144 = vector.load %arg5[%c0_36, %c0_37] : memref<4x1xf32, #tpu.memory_space<vmem>>, vector<4x1xf32>
    %145 = vector.broadcast %144 : vector<4x1xf32> to vector<4x256xf32>
    %146 = arith.addf %143, %145 : vector<4x256xf32>
    %cst_38 = arith.constant 0.000000e+00 : f32
    %147 = vector.broadcast %cst_38 : f32 to vector<4x256xf32>
    %148 = arith.maximumf %146, %147 : vector<4x256xf32>
    %149 = tpu.concatenate %8, %148 in 0 : vector<4x256xf32>, vector<4x256xf32> -> vector<8x256xf32>
    %c0_39 = arith.constant 0 : index
    %c0_40 = arith.constant 0 : index
    %150 = vector.load %arg12[%c0_39, %c0_40] : memref<256x64xbf16, #tpu.memory_space<vmem>>, vector<256x64xbf16>
    %151 = arith.extf %150 : vector<256x64xbf16> to vector<256x64xf32>
    %cst_41 = arith.constant dense<0.000000e+00> : vector<4x64xf32>
    %152 = tpu.matmul %1, %151, %cst_41 {dimension_numbers = #tpu.dot_dimension_numbers<[1], [0], [0], [1], [0, 0, 1, 1], [], []>} : vector<4x256xf32>, vector<256x64xf32>, vector<4x64xf32> -> vector<4x64xf32>
    %c0_42 = arith.constant 0 : index
    %c0_43 = arith.constant 0 : index
    %153 = vector.load %arg6[%c0_42, %c0_43] : memref<8x4xf32, #tpu.memory_space<vmem>>, vector<8x4xf32>
    %cst_44 = arith.constant dense<0.000000e+00> : vector<8x64xf32>
    %154 = tpu.matmul %153, %152, %cst_44 {dimension_numbers = #tpu.dot_dimension_numbers<[1], [0], [0], [1], [0, 0, 1, 1], [], []>} : vector<8x4xf32>, vector<4x64xf32>, vector<8x64xf32> -> vector<8x64xf32>
    %c0_45 = arith.constant 0 : index
    %c0_46 = arith.constant 0 : index
    %155 = vector.load %arg7[%c0_45, %c0_46] : memref<8x1xf32, #tpu.memory_space<vmem>>, vector<8x1xf32>
    %156 = vector.broadcast %155 : vector<8x1xf32> to vector<8x64xf32>
    %157 = arith.addf %154, %156 : vector<8x64xf32>
    %158 = tpu.iota {dimensions = array<i32: 1>} : vector<1x64xi32>
    %c8_i32 = arith.constant 8 : i32
    %c0_i32_47 = arith.constant 0 : i32
    %159 = arith.cmpi eq, %c8_i32, %c0_i32_47 : i32
    %c1_i32_48 = arith.constant 1 : i32
    %160 = arith.select %159, %c1_i32_48, %c8_i32 : i32
    %161 = vector.broadcast %160 : i32 to vector<1x64xi32>
    %162 = arith.remsi %158, %161 : vector<1x64xi32>
    %c0_i32_49 = arith.constant 0 : i32
    %163 = vector.broadcast %c0_i32_49 : i32 to vector<1x64xi32>
    %164 = arith.cmpi ne, %162, %163 : vector<1x64xi32>
    %c0_i32_50 = arith.constant 0 : i32
    %165 = vector.broadcast %c0_i32_50 : i32 to vector<1x64xi32>
    %166 = arith.cmpi slt, %162, %165 : vector<1x64xi32>
    %c0_i32_51 = arith.constant 0 : i32
    %167 = arith.cmpi slt, %160, %c0_i32_51 : i32
    %168 = vector.broadcast %167 : i1 to vector<1x64xi1>
    %169 = vector.broadcast %168 : vector<1x64xi1> to vector<1x64xi1>
    %170 = arith.xori %166, %169 : vector<1x64xi1>
    %171 = arith.andi %170, %164 : vector<1x64xi1>
    %172 = vector.broadcast %160 : i32 to vector<1x64xi32>
    %173 = arith.addi %162, %172 : vector<1x64xi32>
    %174 = arith.select %171, %173, %162 : vector<1x64xi1>, vector<1x64xi32>
    %c-2_i32 = arith.constant -2 : i32
    %175 = vector.broadcast %c-2_i32 : i32 to vector<1x64xi32>
    %176 = arith.addi %174, %175 : vector<1x64xi32>
    %c0_i32_52 = arith.constant 0 : i32
    %177 = vector.broadcast %c0_i32_52 : i32 to vector<1x64xi32>
    %178 = arith.cmpi sge, %176, %177 : vector<1x64xi32>
    %c-2_i32_53 = arith.constant -2 : i32
    %179 = vector.broadcast %c-2_i32_53 : i32 to vector<1x64xi32>
    %180 = arith.addi %174, %179 : vector<1x64xi32>
    %c8_i32_54 = arith.constant 8 : i32
    %181 = vector.broadcast %c8_i32_54 : i32 to vector<1x64xi32>
    %182 = arith.cmpi slt, %180, %181 : vector<1x64xi32>
    %183 = arith.andi %178, %182 : vector<1x64xi1>
    %c-1_i32_55 = arith.constant -1 : i32
    %184 = vector.broadcast %c-1_i32_55 : i32 to vector<1x64xi32>
    %185 = arith.addi %174, %184 : vector<1x64xi32>
    %c0_i32_56 = arith.constant 0 : i32
    %186 = vector.broadcast %c0_i32_56 : i32 to vector<1x64xi32>
    %187 = arith.cmpi sge, %185, %186 : vector<1x64xi32>
    %c-1_i32_57 = arith.constant -1 : i32
    %188 = vector.broadcast %c-1_i32_57 : i32 to vector<1x64xi32>
    %189 = arith.addi %174, %188 : vector<1x64xi32>
    %c8_i32_58 = arith.constant 8 : i32
    %190 = vector.broadcast %c8_i32_58 : i32 to vector<1x64xi32>
    %191 = arith.cmpi slt, %189, %190 : vector<1x64xi32>
    %192 = arith.andi %187, %191 : vector<1x64xi1>
    %c1_i32_59 = arith.constant 1 : i32
    %193 = vector.broadcast %c1_i32_59 : i32 to vector<1x64xi32>
    %194 = arith.addi %174, %193 : vector<1x64xi32>
    %c0_i32_60 = arith.constant 0 : i32
    %195 = vector.broadcast %c0_i32_60 : i32 to vector<1x64xi32>
    %196 = arith.cmpi sge, %194, %195 : vector<1x64xi32>
    %c1_i32_61 = arith.constant 1 : i32
    %197 = vector.broadcast %c1_i32_61 : i32 to vector<1x64xi32>
    %198 = arith.addi %174, %197 : vector<1x64xi32>
    %c8_i32_62 = arith.constant 8 : i32
    %199 = vector.broadcast %c8_i32_62 : i32 to vector<1x64xi32>
    %200 = arith.cmpi slt, %198, %199 : vector<1x64xi32>
    %201 = arith.andi %196, %200 : vector<1x64xi1>
    %c2_i32 = arith.constant 2 : i32
    %202 = vector.broadcast %c2_i32 : i32 to vector<1x64xi32>
    %203 = arith.addi %174, %202 : vector<1x64xi32>
    %c0_i32_63 = arith.constant 0 : i32
    %204 = vector.broadcast %c0_i32_63 : i32 to vector<1x64xi32>
    %205 = arith.cmpi sge, %203, %204 : vector<1x64xi32>
    %c2_i32_64 = arith.constant 2 : i32
    %206 = vector.broadcast %c2_i32_64 : i32 to vector<1x64xi32>
    %207 = arith.addi %174, %206 : vector<1x64xi32>
    %c8_i32_65 = arith.constant 8 : i32
    %208 = vector.broadcast %c8_i32_65 : i32 to vector<1x64xi32>
    %209 = arith.cmpi slt, %207, %208 : vector<1x64xi32>
    %210 = arith.andi %205, %209 : vector<1x64xi1>
    %c0_66 = arith.constant 0 : index
    %c0_67 = arith.constant 0 : index
    %211 = vector.load %arg8[%c0_66, %c0_67] : memref<8x5xf32, #tpu.memory_space<vmem>>, vector<8x5xf32>
    %cst_68 = arith.constant 0.000000e+00 : f32
    %212 = vector.broadcast %cst_68 : f32 to vector<8x64xf32>
    %cst_69 = arith.constant 0.000000e+00 : f32
    %213 = vector.broadcast %cst_69 : f32 to vector<8x2xf32>
    %214 = vector.extract_strided_slice %157 {offsets = [0, 0], sizes = [8, 62], strides = [1, 1]} : vector<8x64xf32> to vector<8x62xf32>
    %215 = tpu.concatenate %213, %214 in 1 : vector<8x2xf32>, vector<8x62xf32> -> vector<8x64xf32>
    %cst_70 = arith.constant 0.000000e+00 : f32
    %216 = vector.shape_cast %183 : vector<1x64xi1> to vector<1x64xi1>
    %217 = vector.broadcast %216 : vector<1x64xi1> to vector<8x64xi1>
    %218 = vector.broadcast %cst_70 : f32 to vector<8x64xf32>
    %219 = arith.select %217, %215, %218 : vector<8x64xi1>, vector<8x64xf32>
    %220 = vector.extract_strided_slice %211 {offsets = [0, 0], sizes = [8, 1], strides = [1, 1]} : vector<8x5xf32> to vector<8x1xf32>
    %221 = vector.broadcast %220 : vector<8x1xf32> to vector<8x64xf32>
    %222 = arith.mulf %221, %219 : vector<8x64xf32>
    %223 = arith.addf %212, %222 : vector<8x64xf32>
    %cst_71 = arith.constant 0.000000e+00 : f32
    %224 = vector.broadcast %cst_71 : f32 to vector<8x1xf32>
    %225 = vector.extract_strided_slice %157 {offsets = [0, 0], sizes = [8, 63], strides = [1, 1]} : vector<8x64xf32> to vector<8x63xf32>
    %226 = tpu.concatenate %224, %225 in 1 : vector<8x1xf32>, vector<8x63xf32> -> vector<8x64xf32>
    %cst_72 = arith.constant 0.000000e+00 : f32
    %227 = vector.shape_cast %192 : vector<1x64xi1> to vector<1x64xi1>
    %228 = vector.broadcast %227 : vector<1x64xi1> to vector<8x64xi1>
    %229 = vector.broadcast %cst_72 : f32 to vector<8x64xf32>
    %230 = arith.select %228, %226, %229 : vector<8x64xi1>, vector<8x64xf32>
    %231 = vector.extract_strided_slice %211 {offsets = [0, 1], sizes = [8, 1], strides = [1, 1]} : vector<8x5xf32> to vector<8x1xf32>
    %232 = vector.broadcast %231 : vector<8x1xf32> to vector<8x64xf32>
    %233 = arith.mulf %232, %230 : vector<8x64xf32>
    %234 = arith.addf %223, %233 : vector<8x64xf32>
    %235 = vector.extract_strided_slice %211 {offsets = [0, 2], sizes = [8, 1], strides = [1, 1]} : vector<8x5xf32> to vector<8x1xf32>
    %236 = vector.broadcast %235 : vector<8x1xf32> to vector<8x64xf32>
    %237 = arith.mulf %236, %157 : vector<8x64xf32>
    %238 = arith.addf %234, %237 : vector<8x64xf32>
    %cst_73 = arith.constant 0.000000e+00 : f32
    %239 = vector.broadcast %cst_73 : f32 to vector<8x1xf32>
    %240 = vector.extract_strided_slice %157 {offsets = [0, 1], sizes = [8, 63], strides = [1, 1]} : vector<8x64xf32> to vector<8x63xf32>
    %241 = tpu.concatenate %240, %239 in 1 : vector<8x63xf32>, vector<8x1xf32> -> vector<8x64xf32>
    %cst_74 = arith.constant 0.000000e+00 : f32
    %242 = vector.shape_cast %201 : vector<1x64xi1> to vector<1x64xi1>
    %243 = vector.broadcast %242 : vector<1x64xi1> to vector<8x64xi1>
    %244 = vector.broadcast %cst_74 : f32 to vector<8x64xf32>
    %245 = arith.select %243, %241, %244 : vector<8x64xi1>, vector<8x64xf32>
    %246 = vector.extract_strided_slice %211 {offsets = [0, 3], sizes = [8, 1], strides = [1, 1]} : vector<8x5xf32> to vector<8x1xf32>
    %247 = vector.broadcast %246 : vector<8x1xf32> to vector<8x64xf32>
    %248 = arith.mulf %247, %245 : vector<8x64xf32>
    %249 = arith.addf %238, %248 : vector<8x64xf32>
    %cst_75 = arith.constant 0.000000e+00 : f32
    %250 = vector.broadcast %cst_75 : f32 to vector<8x2xf32>
    %251 = vector.extract_strided_slice %157 {offsets = [0, 2], sizes = [8, 62], strides = [1, 1]} : vector<8x64xf32> to vector<8x62xf32>
    %252 = tpu.concatenate %251, %250 in 1 : vector<8x62xf32>, vector<8x2xf32> -> vector<8x64xf32>
    %cst_76 = arith.constant 0.000000e+00 : f32
    %253 = vector.shape_cast %210 : vector<1x64xi1> to vector<1x64xi1>
    %254 = vector.broadcast %253 : vector<1x64xi1> to vector<8x64xi1>
    %255 = vector.broadcast %cst_76 : f32 to vector<8x64xf32>
    %256 = arith.select %254, %252, %255 : vector<8x64xi1>, vector<8x64xf32>
    %257 = vector.extract_strided_slice %211 {offsets = [0, 4], sizes = [8, 1], strides = [1, 1]} : vector<8x5xf32> to vector<8x1xf32>
    %258 = vector.broadcast %257 : vector<8x1xf32> to vector<8x64xf32>
    %259 = arith.mulf %258, %256 : vector<8x64xf32>
    %260 = arith.addf %249, %259 : vector<8x64xf32>
    %c0_77 = arith.constant 0 : index
    %c0_78 = arith.constant 0 : index
    %261 = vector.load %arg9[%c0_77, %c0_78] : memref<8x1xf32, #tpu.memory_space<vmem>>, vector<8x1xf32>
    %262 = vector.broadcast %261 : vector<8x1xf32> to vector<8x64xf32>
    %263 = arith.addf %260, %262 : vector<8x64xf32>
    %c0_79 = arith.constant 0 : index
    %c0_80 = arith.constant 0 : index
    %264 = vector.load %arg10[%c0_79, %c0_80] : memref<8x5xf32, #tpu.memory_space<vmem>>, vector<8x5xf32>
    %cst_81 = arith.constant 0.000000e+00 : f32
    %265 = vector.broadcast %cst_81 : f32 to vector<8x64xf32>
    %266 = vector.extract_strided_slice %264 {offsets = [0, 0], sizes = [8, 1], strides = [1, 1]} : vector<8x5xf32> to vector<8x1xf32>
    %cst_82 = arith.constant 0.000000e+00 : f32
    %267 = vector.broadcast %cst_82 : f32 to vector<8x16xf32>
    %268 = vector.extract_strided_slice %263 {offsets = [0, 0], sizes = [8, 48], strides = [1, 1]} : vector<8x64xf32> to vector<8x48xf32>
    %269 = tpu.concatenate %267, %268 in 1 : vector<8x16xf32>, vector<8x48xf32> -> vector<8x64xf32>
    %270 = vector.broadcast %266 : vector<8x1xf32> to vector<8x64xf32>
    %271 = arith.mulf %270, %269 : vector<8x64xf32>
    %272 = arith.addf %265, %271 : vector<8x64xf32>
    %273 = vector.extract_strided_slice %264 {offsets = [0, 1], sizes = [8, 1], strides = [1, 1]} : vector<8x5xf32> to vector<8x1xf32>
    %cst_83 = arith.constant 0.000000e+00 : f32
    %274 = vector.broadcast %cst_83 : f32 to vector<8x8xf32>
    %275 = vector.extract_strided_slice %263 {offsets = [0, 0], sizes = [8, 56], strides = [1, 1]} : vector<8x64xf32> to vector<8x56xf32>
    %276 = tpu.concatenate %274, %275 in 1 : vector<8x8xf32>, vector<8x56xf32> -> vector<8x64xf32>
    %277 = vector.broadcast %273 : vector<8x1xf32> to vector<8x64xf32>
    %278 = arith.mulf %277, %276 : vector<8x64xf32>
    %279 = arith.addf %272, %278 : vector<8x64xf32>
    %280 = vector.extract_strided_slice %264 {offsets = [0, 2], sizes = [8, 1], strides = [1, 1]} : vector<8x5xf32> to vector<8x1xf32>
    %281 = vector.broadcast %280 : vector<8x1xf32> to vector<8x64xf32>
    %282 = arith.mulf %281, %263 : vector<8x64xf32>
    %283 = arith.addf %279, %282 : vector<8x64xf32>
    %284 = vector.extract_strided_slice %264 {offsets = [0, 3], sizes = [8, 1], strides = [1, 1]} : vector<8x5xf32> to vector<8x1xf32>
    %cst_84 = arith.constant 0.000000e+00 : f32
    %285 = vector.broadcast %cst_84 : f32 to vector<8x8xf32>
    %286 = vector.extract_strided_slice %263 {offsets = [0, 8], sizes = [8, 56], strides = [1, 1]} : vector<8x64xf32> to vector<8x56xf32>
    %287 = tpu.concatenate %286, %285 in 1 : vector<8x56xf32>, vector<8x8xf32> -> vector<8x64xf32>
    %288 = vector.broadcast %284 : vector<8x1xf32> to vector<8x64xf32>
    %289 = arith.mulf %288, %287 : vector<8x64xf32>
    %290 = arith.addf %283, %289 : vector<8x64xf32>
    %291 = vector.extract_strided_slice %264 {offsets = [0, 4], sizes = [8, 1], strides = [1, 1]} : vector<8x5xf32> to vector<8x1xf32>
    %cst_85 = arith.constant 0.000000e+00 : f32
    %292 = vector.broadcast %cst_85 : f32 to vector<8x16xf32>
    %293 = vector.extract_strided_slice %263 {offsets = [0, 16], sizes = [8, 48], strides = [1, 1]} : vector<8x64xf32> to vector<8x48xf32>
    %294 = tpu.concatenate %293, %292 in 1 : vector<8x48xf32>, vector<8x16xf32> -> vector<8x64xf32>
    %295 = vector.broadcast %291 : vector<8x1xf32> to vector<8x64xf32>
    %296 = arith.mulf %295, %294 : vector<8x64xf32>
    %297 = arith.addf %290, %296 : vector<8x64xf32>
    %c0_86 = arith.constant 0 : index
    %c0_87 = arith.constant 0 : index
    %298 = vector.load %arg11[%c0_86, %c0_87] : memref<8x1xf32, #tpu.memory_space<vmem>>, vector<8x1xf32>
    %299 = vector.broadcast %298 : vector<8x1xf32> to vector<8x64xf32>
    %300 = arith.addf %297, %299 : vector<8x64xf32>
    %301 = arith.negf %300 : vector<8x64xf32>
    %302 = math.exp %301 : vector<8x64xf32>
    %cst_88 = arith.constant 1.000000e+00 : f32
    %303 = vector.broadcast %cst_88 : f32 to vector<8x64xf32>
    %304 = arith.addf %303, %302 : vector<8x64xf32>
    %305 = arith.divf %303, %304 : vector<8x64xf32>
    %c0_89 = arith.constant 0 : index
    %c0_90 = arith.constant 0 : index
    %306 = vector.load %arg13[%c0_89, %c0_90] : memref<64x256xbf16, #tpu.memory_space<vmem>>, vector<64x256xbf16>
    %307 = arith.extf %306 : vector<64x256xbf16> to vector<64x256xf32>
    %cst_91 = arith.constant dense<0.000000e+00> : vector<8x256xf32>
    %308 = tpu.matmul %305, %307, %cst_91 {dimension_numbers = #tpu.dot_dimension_numbers<[1], [0], [0], [1], [0, 0, 1, 1], [], []>} : vector<8x64xf32>, vector<64x256xf32>, vector<8x256xf32> -> vector<8x256xf32>
    %309 = arith.mulf %149, %308 : vector<8x256xf32>
    %c0_92 = arith.constant 0 : index
    %c0_93 = arith.constant 0 : index
    %c0_94 = arith.constant 0 : index
    %310 = vector.load %arg14[%c0_92, %c0_93, %c0_94] : memref<1x8x256xf32, #tpu.memory_space<vmem>>, vector<1x8x256xf32>
    %311 = vector.shape_cast %310 : vector<1x8x256xf32> to vector<8x256xf32>
    %312 = vector.shape_cast %309 : vector<8x256xf32> to vector<1x8x256xf32>
    tpu.vector_store %arg14[%c0_92, %c0_93, %c0_94], %312 {strides = array<i32>} : memref<1x8x256xf32, #tpu.memory_space<vmem>>, vector<1x8x256xf32>,
    return
  }
  func.func @transform_0(%arg0: i32) -> (i32, i32, i32) {
    %c0_i32 = arith.constant 0 : i32
    %c0_i32_0 = arith.constant 0 : i32
    %c0_i32_1 = arith.constant 0 : i32
    return %arg0, %c0_i32, %c0_i32_0 : i32, i32, i32
  }
  func.func @transform_1(%arg0: i32) -> (i32, i32) {
    %c0_i32 = arith.constant 0 : i32
    %c0_i32_0 = arith.constant 0 : i32
    %c0_i32_1 = arith.constant 0 : i32
    return %c0_i32, %c0_i32_0 : i32, i32
  }
  func.func @transform_2(%arg0: i32) -> (i32, i32) {
    %c0_i32 = arith.constant 0 : i32
    %c0_i32_0 = arith.constant 0 : i32
    %c0_i32_1 = arith.constant 0 : i32
    return %c0_i32, %c0_i32_0 : i32, i32
  }
  func.func @transform_3(%arg0: i32) -> (i32, i32) {
    %c0_i32 = arith.constant 0 : i32
    %c0_i32_0 = arith.constant 0 : i32
    %c0_i32_1 = arith.constant 0 : i32
    return %c0_i32, %c0_i32_0 : i32, i32
  }
  func.func @transform_4(%arg0: i32) -> (i32, i32) {
    %c0_i32 = arith.constant 0 : i32
    %c0_i32_0 = arith.constant 0 : i32
    %c0_i32_1 = arith.constant 0 : i32
    return %c0_i32, %c0_i32_0 : i32, i32
  }
  func.func @transform_5(%arg0: i32) -> (i32, i32) {
    %c0_i32 = arith.constant 0 : i32
    %c0_i32_0 = arith.constant 0 : i32
    %c0_i32_1 = arith.constant 0 : i32
    return %c0_i32, %c0_i32_0 : i32, i32
  }
  func.func @transform_6(%arg0: i32) -> (i32, i32) {
    %c0_i32 = arith.constant 0 : i32
    %c0_i32_0 = arith.constant 0 : i32
    %c0_i32_1 = arith.constant 0 : i32
    return %c0_i32, %c0_i32_0 : i32, i32
  }
  func.func @transform_7(%arg0: i32) -> (i32, i32) {
    %c0_i32 = arith.constant 0 : i32
    %c0_i32_0 = arith.constant 0 : i32
    %c0_i32_1 = arith.constant 0 : i32
    return %c0_i32, %c0_i32_0 : i32, i32
  }
  func.func @transform_8(%arg0: i32) -> (i32, i32) {
    %c0_i32 = arith.constant 0 : i32
    %c0_i32_0 = arith.constant 0 : i32
    %c0_i32_1 = arith.constant 0 : i32
    return %c0_i32, %c0_i32_0 : i32, i32
  }
  func.func @transform_9(%arg0: i32) -> (i32, i32) {
    %c0_i32 = arith.constant 0 : i32
    %c0_i32_0 = arith.constant 0 : i32
    %c0_i32_1 = arith.constant 0 : i32
    return %c0_i32, %c0_i32_0 : i32, i32
  }
  func.func @transform_10(%arg0: i32) -> (i32, i32) {
    %c0_i32 = arith.constant 0 : i32
    %c0_i32_0 = arith.constant 0 : i32
    %c0_i32_1 = arith.constant 0 : i32
    return %c0_i32, %c0_i32_0 : i32, i32
  }
  func.func @transform_11(%arg0: i32) -> (i32, i32) {
    %c0_i32 = arith.constant 0 : i32
    %c0_i32_0 = arith.constant 0 : i32
    %c0_i32_1 = arith.constant 0 : i32
    return %c0_i32, %c0_i32_0 : i32, i32
  }
  func.func @transform_12(%arg0: i32) -> (i32, i32) {
    %c0_i32 = arith.constant 0 : i32
    %c0_i32_0 = arith.constant 0 : i32
    %c0_i32_1 = arith.constant 0 : i32
    return %c0_i32, %c0_i32_0 : i32, i32
  }
  func.func @transform_13(%arg0: i32) -> (i32, i32, i32) {
    %c0_i32 = arith.constant 0 : i32
    %c0_i32_0 = arith.constant 0 : i32
    %c0_i32_1 = arith.constant 0 : i32
    return %arg0, %c0_i32, %c0_i32_0 : i32, i32, i32
  }
}

</mosaic_0001>

<bundles_post_ra>
// kernel: ghost_module_v2_forward.1
= control target key start
LH: loop header
LB: loop body
LE: loop exit
PB: predicated region body
PF: predicated region fallthrough
CT: control target
= control target key end

     0   :  { %s1705_s25 = smov 0   ;;  %s2041_s0 = inlined_call_operand.vmem [shape: f32[2,4,256], index: 0, kind: input, shape index: {}]   ;;  %s2042_s1 = inlined_call_operand.vmem [shape: f32[4,4], index: 1, kind: input, shape index: {}]   ;;  %s2043_s2 = inlined_call_operand.vmem [shape: f32[4,1], index: 2, kind: input, shape index: {}]   ;;  %s2044_s3 = inlined_call_operand.vmem [shape: f32[4,9], index: 3, kind: input, shape index: {}]   ;;  %s2045_s4 = inlined_call_operand.vmem [shape: f32[4,1], index: 4, kind: input, shape index: {}]   ;;  %s2046_s5 = inlined_call_operand.vmem [shape: f32[8,4], index: 5, kind: input, shape index: {}]   ;;  %s2047_s6 = inlined_call_operand.vmem [shape: f32[8,1], index: 6, kind: input, shape index: {}]   ;;  %s2048_s7 = inlined_call_operand.vmem [shape: f32[8,5], index: 7, kind: input, shape index: {}]   ;;  %s2049_s8 = inlined_call_operand.vmem [shape: f32[8,1], index: 8, kind: input, shape index: {}]   ;;  %s2050_s9 = inlined_call_operand.vmem [shape: f32[8,5], index: 9, kind: input, shape index: {}]   ;;  %s2051_s10 = inlined_call_operand.vmem [shape: f32[8,1], index: 10, kind: input, shape index: {}]   ;;  %s2052_s11 = inlined_call_operand.vmem [shape: bf16[256,64], index: 11, kind: input, shape index: {}]   ;;  %s2053_s12 = inlined_call_operand.vmem [shape: bf16[64,256], index: 12, kind: input, shape index: {}]   ;;  %s2054_s13 = inlined_call_operand.vmem [shape: f32[2,8,256], index: 13, kind: output, shape index: {}]  }
   0x1 LB: > { %s1338_s26 = sadd.s32 4294967295, %s1610_s25   ;;  %p1342_p0 = scmp.ge.s32.totalorder %s1610_s25, 1  ;;  %s1610_s25 = sphi %s1705_s25, %s23_s25  }
   0x2   : > { %p387_p1 = scmp.lt.s32.totalorder %s1610_s25, 3 }
   0x4   : > { %p388_p2 = pnand %p1342_p0, %p387_p1 }
   0x5   : > { %v1429_v0 = vld [vmem:[%s2052_s11 + $0x40] sm:$0xff] (!%p388_p2)   ;;  %v1430_v2 = vld [vmem:[%s2052_s11 + $0x48] sm:$0xff] (!%p388_p2)   ;;  %p431_p3 = scmp.lt.s32.totalorder (!%p388_p2), %s1338_s26, 1  ;;  %v1612_v3 = vmov (!%p388_p2), 0.0   ;;  %v1431_v5 = vld [vmem:[%s2052_s11 + $0x50] sm:$0xff] (!%p388_p2)   ;;  %vm455_vm0 = vcmask (!%p388_p2), 1043456   ;;  %v533_v39 = vlaneseq (!%p388_p2) }
   0x6   : > { %391 = sbr.rel (%p388_p2) target bundleno = 996 (0x3e4), region = 72  ;;  %v1359_v1 = vld [vmem:[%s2052_s11] sm:$0xff] (!%p388_p2)   ;;  %1480 = vmatprep.subr.bf16.mxu1 (!%p388_p2), %v1429_v0  ;;  %524 = vmatprep.mubr.f32.mxu0 (!%p388_p2), %v1612_v3  ;;  %v1422_v4 = vld [vmem:[%s2052_s11 + $0x8] sm:$0xff] (!%p388_p2)   ;;  %v1423_v6 = vld [vmem:[%s2052_s11 + $0x10] sm:$0xff] (!%p388_p2)   ;;  %vm451_vm1 = vcmask (!%p388_p2), 31744   ;;  %vm1613_vm2 = vmmov (!%p388_p2), 0  }
   0x7   : > { %1482 = vmatpush3.bf16.msra.mxu1 (!%p388_p2), %v1359_v1  ;;  %v1432_v9 = vld [vmem:[%s2052_s11 + $0x58] sm:$0xff] (!%p388_p2)   ;;  %v1433_v11 = vld [vmem:[%s2052_s11 + $0x60] sm:$0xff] (!%p388_p2)   ;;  %v1434_v13 = vld [vmem:[%s2052_s11 + $0x68] sm:$0xff] (!%p388_p2)   ;;  %v1614_v22 = vmov (!%p388_p2), 0   ;;  %v1615_v23 = vmov (!%p388_p2), 1   ;;  %v1616_v24 = vmov (!%p388_p2), 2  }
   0x8   : > { %1484 = vmatprep.subr.bf16.mxu1 (!%p388_p2), %v1430_v2  ;;  %v1424_v10 = vld [vmem:[%s2052_s11 + $0x18] sm:$0xff] (!%p388_p2)   ;;  %v1425_v12 = vld [vmem:[%s2052_s11 + $0x20] sm:$0xff] (!%p388_p2)   ;;  %v1426_v14 = vld [vmem:[%s2052_s11 + $0x28] sm:$0xff] (!%p388_p2)   ;;  %1566 = vset.pattern.permute.xlu0 (!%p388_p2), %v1614_v22  ;;  %v1617_v25 = vmov (!%p388_p2), 3   ;;  %v1618_v26 = vmov (!%p388_p2), 4   ;;  %s1619_s24 = smov (!%p388_p2), 2  }
   0x9   : > { %v1435_v15 = vld [vmem:[%s2052_s11 + $0x70] sm:$0xff] (!%p388_p2)   ;;  %v1436_v17 = vld [vmem:[%s2052_s11 + $0x78] sm:$0xff] (!%p388_p2)   ;;  %v442_v19 = vld [vmem:[%s2042_s1] sm:$0xf] (!%p388_p2)  ;;  %1567 = vset.pattern.permute.xlu1 (!%p388_p2), %v1615_v23  ;;  %s1621_s30 = smov (!%p388_p2), 1   ;;  %s1622_s14 = smov (!%p388_p2), 127  }
   0xa   : > { %v1427_v16 = vld [vmem:[%s2052_s11 + $0x30] sm:$0xff] (!%p388_p2)   ;;  %v1428_v18 = vld [vmem:[%s2052_s11 + $0x38] sm:$0xff] (!%p388_p2)   ;;  %v932_v20 = vld [vmem:[%s2047_s6] sm:$0xff] (!%p388_p2)  ;;  %v1817_v41 = vand.u32 (!%p388_p2), 127, %v533_v39  ;;  %vm1047_vm3 = vcmask (!%p388_p2), 15360   ;;  %vm1062_vm4 = vcmask (!%p388_p2), 7168  }
   0xb   : > { %1486 = vmatpush3.bf16.msra.mxu1 (!%p388_p2), %v1422_v4  ;;  %v1042_v21 = vld [vmem:[%s2048_s7] sm:$0xff] (!%p388_p2)  ;;  %935 = vperm.xlu0 (!%p388_p2), %1566, %v932_v20   ;;  %vm1082_vm7 = vcmask (!%p388_p2), 515072   ;;  %vm1096_vm9 = vcmask (!%p388_p2), 506880   ;;  %s1623_s17 = smov (!%p388_p2), 8   ;;  %s1624_s18 = smov (!%p388_p2), 16   ;;  %vm1131_vm11 = vcmask (!%p388_p2), 64512  }
   0xc   : > { %1488 = vmatprep.subr.bf16.mxu1 (!%p388_p2), %v1431_v5  ;;  %1068 = vperm.xlu1 (!%p388_p2), %1567, %v1042_v21   ;;  %v931_v30 = vld [vmem:[%s2046_s5] sm:$0xff] (!%p388_p2)  ;;  %v1018_v43 = vand.u32 (!%p388_p2), 7, %v1817_v41  ;;  %s1625_s19 = smov (!%p388_p2), 120   ;;  %s1626_s22 = smov (!%p388_p2), 112   ;;  %v1599_v20 = vld [vmem:[%s2053_s12 + $0x30] ss:$8 sps:$4 sm:$0xff] (!%p388_p2)  }
   0xd   : > { %s2062_s26 = smov (!%p431_p3, %s1338_s26), 1  ;;  %v1802_v37 = vld [vmem:[%s2050_s9] sm:$0xff]  ;;  %vm1119_vm12 = vcmask 130048   ;;  %vm1148_vm13 = vcmask 457728   ;;  %vm1159_vm14 = vcmask 392192   ;;  %s1630_s21 = smov 15  }
   0xe   : > { %s1356_s20 = sshll.u32 %s2062_s26, 3  ;;  %v1107_v38 = vld [vmem:[%s2049_s8] sm:$0xff]  ;;  %v1030_v45 = vadd.s32 4294967295, %v1018_v43  ;;  %v1026_v46 = vadd.s32 4294967294, %v1018_v43  ;;  %v1034_v53 = vadd.s32 1, %v1018_v43  ;;  %v1038_v60 = vadd.s32 2, %v1018_v43 }
   0xf   : > { %s435_s27 = scalar_lea.vmem %s2041_s0, %s1356_s20  ;;  %1490 = vmatpush3.bf16.msra.mxu1 %v1423_v6  ;;  %1054 = vperm.xlu0 %1566, %v1042_v21   ;;  %s1628_s20 = smov 17   ;;  %vm1204_vm15 = vcmask 523264  }
  0x10   : > { %v441_v7 = vld [vmem:[%s435_s27] sm:$0xff]  ;;  %1492 = vmatprep.subr.bf16.mxu1 %v1432_v9  ;;  %1568 = vset.pattern.permute.xlu1 %v1616_v24  ;;  %s1620_s27 = smov 126   ;;  %vm1031_vm5 = vcmp.ge.s32.totalorder %v1030_v45, 0  ;;  %vm1027_vm6 = vcmp.ge.s32.totalorder %v1026_v46, 0  ;;  %vm1036_vm8 = vcmp.lt.s32.totalorder %v1034_v53, 8  ;;  %vm1040_vm10 = vcmp.lt.s32.totalorder %v1038_v60, 8 }
  0x11   : > { %v450_v8 = vcombine.high %v441_v7, %v441_v7  ;;  %1074 = vperm.xlu1 %1568, %v1042_v21  }
  0x13   : > { %925 = vmatprep.mubr.f32.mxu1 %v450_v8  ;;  %1347 = vmatprep.subr.msk.mxu0 %vm455_vm0, %v450_v8 }
  0x14   : > { %1348 = vmatpush1.msk.msra.mxu0 %vm455_vm0, %v441_v7  ;;  %1494 = vmatpush3.bf16.msra.mxu1 %v1424_v10  ;;  %v1167_v10 = vld [vmem:[%s2051_s10] sm:$0xff] }
  0x15   : > { %1474 = vmatprep.subr.mxu0 %v1612_v3  ;;  %1496 = vmatprep.subr.bf16.mxu1 %v1433_v11  ;;  %v443_v11 = vld [vmem:[%s2043_s2] sm:$0xf] }
  0x16   : > { %1349 = vmatmul.mubr.msk.f32.vlgmr.msra.gmra.mrb[0].mxu0 %vm451_vm1, %v442_v19  ;;  %1569 = vset.pattern.permute.xlu0 %v1617_v25  ;;  %v1597_v19 = vld [vmem:[%s2053_s12 + $0x34] ss:$8 sps:$4 sm:$0xff]  }
  0x17   : > { %1476 = vmatprep.mubr.msk.f32.mxu0 %vm1613_vm2, %v1612_v3  ;;  %1088 = vperm.xlu0 %1569, %v1042_v21  }
  0x18   : > { %1498 = vmatpush3.bf16.msra.mxu1 %v1425_v12  ;;  %1571 = vset.pattern.permute.xlu1 %v1614_v22  ;;  %v1833_v12 = vld [vmem:[%s2044_s3] sm:$0xf] }
  0x19   : > { %1500 = vmatprep.subr.bf16.mxu1 %v1434_v13  ;;  %v1588_v13 = vld [vmem:[%s2053_s12 + $0x4] ss:$8 sps:$4 sm:$0xff]  }
  0x1b   : > { %1570 = vset.pattern.permute.xlu0 %v1618_v26 }
  0x1c   : > { %1502 = vmatpush3.bf16.msra.mxu1 %v1426_v14  ;;  %1102 = vperm.xlu0 %1570, %v1042_v21   ;;  %v1590_v14 = vld [vmem:[%s2053_s12] ss:$8 sps:$4 sm:$0xff]   ;;  %v1627_v21 = vmov 7  }
  0x1d   : > { %1504 = vmatprep.subr.bf16.mxu1 %v1435_v15  ;;  %v1591_v15 = vld [vmem:[%s2053_s12 + $0x14] ss:$8 sps:$4 sm:$0xff]  }
  0x20   : > { %1506 = vmatpush3.bf16.msra.mxu1 %v1427_v16  ;;  %1572 = vset.pattern.permute.xlu0 %v1615_v23  ;;  %v1593_v16 = vld [vmem:[%s2053_s12 + $0x10] ss:$8 sps:$4 sm:$0xff]  }
  0x21   : > { %1508 = vmatprep.subr.bf16.mxu1 %v1436_v17  ;;  %v1594_v17 = vld [vmem:[%s2053_s12 + $0x24] ss:$8 sps:$4 sm:$0xff]  }
  0x24   : > { %1510 = vmatpush3.bf16.msra.mxu1 %v1428_v18  ;;  %v1596_v18 = vld [vmem:[%s2053_s12 + $0x20] ss:$8 sps:$4 sm:$0xff]  }
  0x27   : > { %926 = vmatmul.mubr.f32.vlgmr.msra.gmra.mrb[0].mxu1 %v441_v7 }
  0x8a   : > { %v936_v33 = vpop.permute.xlu0 %935 }
  0x8b   : > { %v1069_v40 = vpop.permute.xlu1 %1068 }
  0x8e   : > { %v1055_v44 = vpop.permute.xlu0 %1054 }
  0x90   : > { %v1075_v42 = vpop.permute.xlu1 %1074 }
  0x96   : > { %v1089_v48 = vpop.permute.xlu0 %1088 }
  0x9b   : > { %v1103_v54 = vpop.permute.xlu0 %1102 }
  0xe9   : > { %v1795_v31 = vpop.f32.mrb[0].mxu0 }
  0xea   : > { %v1797_v32 = vpop.f32.mrb[1].mxu0 }
  0xfa   : > { %v1469_v27 = vpop.f32.mrb[0].mxu1 }
  0xfb   : > { %v1470_v28 = vpop.f32.mrb[1].mxu1 }
  0xfc   : > { %v1471_v29 = vadd.f32 %v1470_v28, %v1469_v27 }
  0xfe   : > { %1475 = vmatpush3.msk.msra.mxu0 %vm455_vm0, %v1471_v29 }
  0xff   : > { %1477 = vmatmul.mubr.msk.f32.vlgmr.msra.gmra.mrb[2].mxu0 %vm451_vm1, %v931_v30  ;;  %1512 = vmatprep.subr.bf16.mxu0 %v1588_v13  ;;  %v535_v13 = vadd.s32 128, %v1817_v41  ;;  %vm627_vm1 = vcmp.lt.s32.totalorder %v1817_v41, 16 }
 0x100   : > { %1272 = vmatprep.mubr.f32.mxu0 %v1612_v3  ;;  %1514 = vmatpush1.bf16.msra.mxu0 %v1590_v14 }
 0x101   : > { %1516 = vmatprep.subr.bf16.mxu0 %v1591_v15 }
 0x104   : > { %1518 = vmatpush1.bf16.msra.mxu0 %v1593_v16  ;;  %v576_v16 = vadd.s32 4294967280, %v1817_v41 }
 0x105   : > { %1520 = vmatprep.subr.bf16.mxu0 %v1594_v17 }
 0x108   : > { %1522 = vmatpush1.bf16.msra.mxu0 %v1596_v18  ;;  %v547_v18 = vand.u32 15, %v535_v13 }
 0x109   : > { %1524 = vmatprep.subr.bf16.mxu0 %v1597_v19 }
 0x10c   : > { %1526 = vmatpush1.bf16.msra.mxu0 %v1599_v20 }
 0x1d2   : > { %v1010_v34 = vpop.f32.mrb[2].mxu0 }
 0x1d3   : > { %v1011_v35 = vadd.f32 %v1010_v34, %v936_v33  ;;  %v1478_v36 = vpop.f32.mrb[3].mxu0 }
 0x1d5   : > { %1044 = vrot.lane.b32.xlu1 %v1011_v35, %s1619_s24  ;;  %1093 = vrot.lane.b32.xlu0 %v1011_v35, %s1620_s27  ;;  %v1077_v0 = vmul.f32 %v1075_v42, %v1011_v35 }
 0x1d9   : > { %1059 = vrot.lane.b32.xlu1 %v1011_v35, %s1621_s30  ;;  %1134 = vperm.xlu0 %1572, %v1802_v37  }
 0x1dd   : > { %1079 = vrot.lane.b32.xlu1 %v1011_v35, %s1622_s14  ;;  %1575 = vset.pattern.permute.xlu0 %v1618_v26 }
 0x1e1   : > { %1110 = vperm.xlu1 %1571, %v1107_v38  }
 0x1e5   : > { %1123 = vperm.xlu1 %1571, %v1802_v37  }
 0x1e9   : > { %1573 = vset.pattern.permute.xlu1 %v1616_v24 }
 0x1ea   : > { %1140 = vperm.xlu1 %1573, %v1802_v37  }
 0x1ee   : > { %1574 = vset.pattern.permute.xlu1 %v1617_v25 }
 0x1ef   : > { %1151 = vperm.xlu1 %1574, %v1802_v37  }
 0x1f3   : > { %1576 = vset.pattern.permute.xlu1 %v1614_v22 }
 0x247   : > { %v1045_v47 = vpop.permute.xlu1 %1044  ;;  %v1094_v62 = vpop.permute.xlu0 %1093 }
 0x248   : > { %v1048_v49 = vsel %vm1047_vm3, 0.0, %v1045_v47  ;;  %v1097_v1 = vsel %vm1096_vm9, %v1094_v62, 0.0  ;;  %vm578_vm3 = vcmp.ge.s32.totalorder %v576_v16, 0 }
 0x249   : > { %v1051_v55 = vsel %vm1027_vm6, %v1048_v49, 0.0  ;;  %v1100_v4 = vsel %vm1040_vm10, %v1097_v1, 0.0  ;;  %vm648_vm6 = vcmp.lt.s32.totalorder %v1817_v41, 15 }
 0x24a   : > { %v1057_v58 = vmul.f32 %v1055_v44, %v1051_v55  ;;  %v1105_v6 = vmul.f32 %v1103_v54, %v1100_v4 }
 0x24b   : > { %v1060_v50 = vpop.permute.xlu1 %1059 }
 0x24c   : > { %v1063_v51 = vsel %vm1062_vm4, 0.0, %v1060_v50  ;;  %vm605_vm4 = vcmp.lt.s32.totalorder %v1817_v41, 17 }
 0x24d   : > { %v1066_v52 = vsel %vm1031_vm5, %v1063_v51, 0.0 }
 0x24e   : > { %v1071_v56 = vmul.f32 %v1069_v40, %v1066_v52 }
 0x24f   : > { %v1080_v57 = vpop.permute.xlu1 %1079 }
 0x250   : > { %v1083_v59 = vsel %vm1082_vm7, %v1080_v57, 0.0  ;;  %v1072_v61 = vadd.f32 %v1071_v56, %v1057_v58  ;;  %v1631_v57 = vmov 6  }
 0x251   : > { %v1086_v63 = vsel %vm1036_vm8, %v1083_v59, 0.0  ;;  %v778_v59 = vld [vmem:[%s2045_s4] sm:$0xf]  ;;  %vm669_vm8 = vcmp.lt.s32.totalorder %v1817_v41, 1 }
 0x252   : > { %v1091_v2 = vmul.f32 %v1089_v48, %v1086_v63  ;;  %v1078_v3 = vadd.f32 %v1077_v0, %v1072_v61 }
 0x254   : > { %v1092_v5 = vadd.f32 %v1091_v2, %v1078_v3 }
 0x256   : > { %v1106_v7 = vadd.f32 %v1105_v6, %v1092_v5 }
 0x260   : > { %v1111_v8 = vpop.permute.xlu1 %1110 }
 0x261   : > { %v1113_v9 = vadd.f32 %v1111_v8, %v1106_v7 }
 0x263   : > { %1128 = vrot.lane.b32.xlu1 %v1113_v9, %s1623_s17  ;;  %1116 = vrot.lane.b32.xlu0 %v1113_v9, %s1624_s18 }
 0x267   : > { %1145 = vrot.lane.b32.xlu1 %v1113_v9, %s1625_s19  ;;  %1162 = vperm.xlu0 %1575, %v1802_v37  }
 0x26b   : > { %1170 = vperm.xlu1 %1576, %v1167_v10   ;;  %1156 = vrot.lane.b32.xlu0 %v1113_v9, %s1626_s22 }
 0x26c   : > { %1577 = vset.pattern.permute.xlu0 %v1614_v22 }
 0x26f   : > { %446 = vperm.xlu1 %1576, %v443_v11   ;;  %616 = vperm.xlu0 %1577, %v1833_v12   ;;  %v540_v11 = vand.u32 15, %v1817_v41 }
 0x271   : > { %v1920_v15 = vadd.s32 4294967295, %v540_v11  ;;  %v1923_v17 = vadd.s32 1, %v540_v11 }
 0x273   : > { %1578 = vset.pattern.permute.xlu1 %v1615_v23  ;;  %1580 = vset.pattern.permute.xlu0 %v1617_v25  ;;  %v1124_v23 = vpop.permute.xlu1 %1123  ;;  %v1135_v25 = vpop.permute.xlu0 %1134  ;;  %vm562_vm2 = vcmp.ge.s32.totalorder %v1920_v15, 0  ;;  %vm572_vm5 = vcmp.lt.s32.totalorder %v1923_v17, 16 }
 0x274   : > { %637 = vperm.xlu1 %1578, %v1833_v12   ;;  %679 = vperm.xlu0 %1580, %v1833_v12   ;;  %vm1938_vm7 = vmand %vm578_vm3, %vm562_vm2 }
 0x275   : > { %vm1947_vm9 = vmand %vm578_vm3, %vm572_vm5 }
 0x278   : > { %1579 = vset.pattern.permute.xlu1 %v1616_v24  ;;  %1581 = vset.pattern.permute.xlu0 %v1618_v26  ;;  %v1141_v24 = vpop.permute.xlu1 %1140 }
 0x279   : > { %658 = vperm.xlu1 %1579, %v1833_v12   ;;  %v1143_v38 = vmul.f32 %v1141_v24, %v1113_v9  ;;  %v1934_v24 = vadd.s32 1, %v547_v18 }
 0x27c   : > { %v1152_v26 = vpop.permute.xlu1 %1151 }
 0x27d   : > { %1584 = vset.pattern.permute.xlu1 %v1627_v21  ;;  %v561_v21 = vadd.s32 4294967295, %v547_v18 }
 0x27f   : > { %vm563_vm10 = vcmp.ge.s32.totalorder %v561_v21, 0 }
 0x2d5   : > { %v1129_v27 = vpop.permute.xlu1 %1128  ;;  %v1117_v28 = vpop.permute.xlu0 %1116 }
 0x2d6   : > { %v1132_v29 = vsel %vm1131_vm11, 0.0, %v1129_v27  ;;  %v1120_v30 = vsel %vm1119_vm12, 0.0, %v1117_v28  ;;  %vm573_vm11 = vcmp.lt.s32.totalorder %v1934_v24, 16  ;;  %vm698_vm12 = vcmp.lt.s32.totalorder %v1817_v41, 127 }
 0x2d7   : > { %v1137_v33 = vmul.f32 %v1135_v25, %v1132_v29  ;;  %v1126_v34 = vmul.f32 %v1124_v23, %v1120_v30 }
 0x2d9   : > { %v1146_v35 = vpop.permute.xlu1 %1145  ;;  %v1138_v36 = vadd.f32 %v1137_v33, %v1126_v34 }
 0x2da   : > { %v1149_v37 = vsel %vm1148_vm13, %v1146_v35, 0.0  ;;  %vm719_vm13 = vcmp.lt.s32.totalorder %v1817_v41, 113 }
 0x2db   : > { %v1144_v40 = vadd.f32 %v1143_v38, %v1138_v36  ;;  %v1154_v42 = vmul.f32 %v1152_v26, %v1149_v37 }
 0x2dd   : > { %v1155_v46 = vadd.f32 %v1154_v42, %v1144_v40 }
 0x2e6   : > { %v1163_v39 = vpop.permute.xlu0 %1162 }
 0x2ea   : > { %v1171_v43 = vpop.permute.xlu1 %1170  ;;  %v1157_v44 = vpop.permute.xlu0 %1156 }
 0x2eb   : > { %v1160_v45 = vsel %vm1159_vm14, %v1157_v44, 0.0  ;;  %v585_v44 = vadd.s32 16, %v535_v13 }
 0x2ec   : > { %v1165_v47 = vmul.f32 %v1163_v39, %v1160_v45 }
 0x2ed   : > { %vm589_vm14 = vcmp.lt.s32.totalorder %v585_v44, 256 }
 0x2ee   : > { %v1166_v48 = vadd.f32 %v1165_v47, %v1155_v46  ;;  %v447_v49 = vpop.permute.xlu1 %446  ;;  %v617_v4 = vpop.permute.xlu0 %616 }
 0x2ef   : > { %v527_v50 = vadd.f32 %v1795_v31, %v447_v49  ;;  %v529_v52 = vadd.f32 %v1797_v32, %v447_v49  ;;  %v1629_v31 = vmov 5  }
 0x2f0   : > { %v1173_v51 = vadd.f32 %v1171_v43, %v1166_v48 }
 0x2f1   : > { %v1869_v53 = vmax.f32 %v527_v50, 0.0  ;;  %v1874_v55 = vmax.f32 %v529_v52, 0.0 }
 0x2f2   : > { %v1352_v54 = vmul.f32 -1.442695, %v1173_v51 }
 0x2f3   : > { %601 = vrot.lane.b32.xlu1 %v1869_v53, %s1628_s20  ;;  %623 = vrot.lane.b32.xlu0 %v1869_v53, %s1624_s18  ;;  %v638_v60 = vpop.permute.xlu1 %637  ;;  %v1908_v6 = vpop.permute.xlu0 %679 }
 0x2f4   : > { %1600 = vpow2.f32 %v1352_v54 }
 0x2f7   : > { %603 = vrot.lane.b32.xlu1 %v1874_v55, %s1628_s20  ;;  %687 = vperm.xlu0 %1581, %v1833_v12  }
 0x2f8   : > { %v1906_v61 = vpop.permute.xlu1 %658 }
 0x2fb   : > { %625 = vrot.lane.b32.xlu1 %v1874_v55, %s1624_s18  ;;  %1582 = vset.pattern.permute.xlu0 %v1629_v31  ;;  %s1632_s18 = smov 113  }
 0x2fc   : > { %708 = vperm.xlu0 %1582, %v1833_v12  }
 0x2fe   : > { %v1601_v32 = vpop.eup %1600 }
 0x2ff   : > { %v1177_v56 = vadd.f32 1.0, %v1601_v32  ;;  %644 = vrot.lane.b32.xlu1 %v1869_v53, %s1630_s21 }
 0x300   : > { %1583 = vset.pattern.permute.xlu0 %v1631_v57 }
 0x301   : > { %1602 = vrcp.f32 %v1177_v56  ;;  %729 = vperm.xlu0 %1583, %v1833_v12  }
 0x303   : > { %646 = vrot.lane.b32.xlu1 %v1874_v55, %s1630_s21 }
 0x305   : > { %696 = vrot.lane.b32.xlu0 %v1874_v55, %s1622_s14 }
 0x306   : > { %1586 = vset.pattern.permute.xlu0 %v1614_v22  ;;  %v1633_v22 = vmov 8  }
 0x307   : > { %665 = vrot.lane.b32.xlu1 %v1869_v53, %s1621_s30 }
 0x309   : > { %715 = vrot.lane.b32.xlu0 %v1869_v53, %s1632_s18 }
 0x30b   : > { %v1603_v58 = vpop.eup %1602  ;;  %667 = vrot.lane.b32.xlu1 %v1874_v55, %s1621_s30  ;;  %s1634_s30 = smov 111  }
 0x30c   : > { %1353 = vmatmul.mubr.msk.f32.vlgmr.msra.gmra.mrb[4].mxu0 %vm1204_vm15, %v1603_v58  ;;  %vm740_vm15 = vcmp.lt.s32.totalorder %v1817_v41, 112 }
 0x30d   : > { %736 = vrot.lane.b32.xlu0 %v1869_v53, %s1626_s22 }
 0x30f   : > { %750 = vperm.xlu1 %1584, %v1833_v12  }
 0x311   : > { %781 = vperm.xlu0 %1586, %v778_v59  }
 0x313   : > { %694 = vrot.lane.b32.xlu1 %v1869_v53, %s1622_s14  ;;  %s1357_s14 = sshll.u32 %s2062_s26, 4 }
 0x314   : > { %1585 = vset.pattern.permute.xlu1 %v1633_v22  ;;  %s440_s28 = scalar_lea.vmem %s2054_s13, %s1357_s14 }
 0x317   : > { %771 = vperm.xlu1 %1585, %v1833_v12  }
 0x31b   : > { %717 = vrot.lane.b32.xlu1 %v1874_v55, %s1632_s18 }
 0x31f   : > { %738 = vrot.lane.b32.xlu1 %v1874_v55, %s1626_s22 }
 0x323   : > { %757 = vrot.lane.b32.xlu1 %v1869_v53, %s1634_s30 }
 0x327   : > { %759 = vrot.lane.b32.xlu1 %v1874_v55, %s1634_s30 }
 0x365   : > { %v602_v62 = vpop.permute.xlu1 %601  ;;  %v624_v8 = vpop.permute.xlu0 %623 }
 0x369   : > { %v604_v63 = vpop.permute.xlu1 %603 }
 0x36a   : > { %v607_v26 = vsel %vm605_vm4, %v604_v63, %v602_v62  ;;  %v606_v35 = vsel %vm605_vm4, %v602_v62, %v604_v63 }
 0x36b   : > { %v612_v36 = vsel %vm1938_vm7, %v607_v26, 0.0  ;;  %v613_v45 = vsel %vm563_vm10, %v606_v35, 0.0 }
 0x36c   : > { %v619_v46 = vmul.f32 %v617_v4, %v612_v36  ;;  %v620_v56 = vmul.f32 %v617_v4, %v613_v45 }
 0x36d   : > { %v626_v0 = vpop.permute.xlu1 %625 }
 0x36e   : > { %v629_v23 = vsel %vm627_vm1, %v626_v0, %v624_v8  ;;  %v628_v39 = vsel %vm627_vm1, %v624_v8, %v626_v0  ;;  %vm1991_vm1 = vmand %vm589_vm14, %vm563_vm10 }
 0x36f   : > { %v634_v29 = vsel %vm578_vm3, %v629_v23, 0.0  ;;  %v641_v49 = vmul.f32 %v638_v60, %v628_v39  ;;  %vm761_vm3 = vcmp.lt.s32.totalorder %v1817_v41, 111 }
 0x370   : > { %v640_v40 = vmul.f32 %v638_v60, %v634_v29 }
 0x371   : > { %v645_v1 = vpop.permute.xlu1 %644  ;;  %v643_v22 = vadd.f32 %v641_v49, %v620_v56 }
 0x372   : > { %v642_v51 = vadd.f32 %v640_v40, %v619_v46 }
 0x375   : > { %v647_v2 = vpop.permute.xlu1 %646 }
 0x376   : > { %v1912_v10 = vpop.permute.xlu0 %687  ;;  %v650_v28 = vsel %vm648_vm6, %v647_v2, %v645_v1  ;;  %v649_v37 = vsel %vm648_vm6, %v645_v1, %v647_v2 }
 0x377   : > { %v655_v38 = vsel %vm1947_vm9, %v650_v28, 0.0  ;;  %v656_v47 = vsel %vm573_vm11, %v649_v37, 0.0  ;;  %v691_v21 = vmul.f32 %v1912_v10, %v1874_v55 }
 0x378   : > { %v661_v48 = vmul.f32 %v1906_v61, %v655_v38  ;;  %v662_v57 = vmul.f32 %v1906_v61, %v656_v47 }
 0x379   : > { %v666_v3 = vpop.permute.xlu1 %665 }
 0x37a   : > { %v663_v58 = vadd.f32 %v661_v48, %v642_v51  ;;  %v664_v1 = vadd.f32 %v662_v57, %v643_v22 }
 0x37b   : > { %v1918_v14 = vpop.permute.xlu0 %708 }
 0x37d   : > { %v668_v5 = vpop.permute.xlu1 %667 }
 0x37e   : > { %v671_v33 = vsel %vm669_vm8, %v668_v5, %v666_v3  ;;  %v670_v42 = vsel %vm669_vm8, %v666_v3, %v668_v5  ;;  %v690_v5 = vmul.f32 %v1912_v10, %v1869_v53 }
 0x37f   : > { %v676_v43 = vsel %vm562_vm2, %v671_v33, 0.0  ;;  %v677_v52 = vsel %vm563_vm10, %v670_v42, 0.0 }
 0x380   : > { %v1927_v20 = vpop.permute.xlu0 %729  ;;  %v682_v54 = vmul.f32 %v1908_v6, %v676_v43  ;;  %v683_v60 = vmul.f32 %v1908_v6, %v677_v52 }
 0x382   : > { %v684_v0 = vadd.f32 %v682_v54, %v663_v58  ;;  %v685_v11 = vadd.f32 %v683_v60, %v664_v1 }
 0x384   : > { %v697_v34 = vpop.permute.xlu0 %696  ;;  %v692_v16 = vadd.f32 %v690_v5, %v684_v0  ;;  %v693_v29 = vadd.f32 %v691_v21, %v685_v11 }
 0x388   : > { %v716_v31 = vpop.permute.xlu0 %715 }
 0x38c   : > { %v737_v6 = vpop.permute.xlu0 %736 }
 0x38e   : > { %v1910_v7 = vpop.permute.xlu1 %750 }
 0x390   : > { %v782_v42 = vpop.permute.xlu0 %781 }
 0x392   : > { %v695_v9 = vpop.permute.xlu1 %694 }
 0x393   : > { %v699_v32 = vsel %vm698_vm12, %v695_v9, %v697_v34  ;;  %v700_v62 = vsel %vm698_vm12, %v697_v34, %v695_v9 }
 0x394   : > { %v705_v63 = vsel %vm572_vm5, %v699_v32, 0.0  ;;  %v706_v8 = vsel %vm573_vm11, %v700_v62, 0.0 }
 0x395   : > { %v711_v9 = vmul.f32 %v1918_v14, %v705_v63  ;;  %v712_v23 = vmul.f32 %v1918_v14, %v706_v8 }
 0x396   : > { %v1915_v12 = vpop.permute.xlu1 %771 }
 0x397   : > { %v713_v27 = vadd.f32 %v711_v9, %v692_v16  ;;  %v714_v35 = vadd.f32 %v712_v23, %v693_v29 }
 0x39a   : > { %v718_v19 = vpop.permute.xlu1 %717 }
 0x39b   : > { %v720_v59 = vsel %vm719_vm13, %v716_v31, %v718_v19  ;;  %v721_v2 = vsel %vm719_vm13, %v718_v19, %v716_v31 }
 0x39c   : > { %v726_v3 = vsel %vm562_vm2, %v720_v59, 0.0  ;;  %v727_v15 = vsel %vm1991_vm1, %v721_v2, 0.0  ;;  %vm599_vm2 = vmand %vm589_vm14, %vm573_vm11 }
 0x39d   : > { %v732_v18 = vmul.f32 %v1927_v20, %v726_v3  ;;  %v733_v33 = vmul.f32 %v1927_v20, %v727_v15 }
 0x39e   : > { %v739_v30 = vpop.permute.xlu1 %738 }
 0x39f   : > { %v742_v13 = vsel %vm740_vm15, %v739_v30, %v737_v6  ;;  %v741_v25 = vsel %vm740_vm15, %v737_v6, %v739_v30  ;;  %v734_v14 = vadd.f32 %v732_v18, %v713_v27  ;;  %v735_v36 = vadd.f32 %v733_v33, %v714_v35 }
 0x3a0   : > { %v748_v28 = vsel %vm589_vm14, %v742_v13, 0.0  ;;  %v753_v34 = vmul.f32 %v1910_v7, %v741_v25 }
 0x3a1   : > { %v754_v24 = vmul.f32 %v1910_v7, %v748_v28 }
 0x3a2   : > { %v758_v50 = vpop.permute.xlu1 %757  ;;  %v755_v38 = vadd.f32 %v753_v34, %v734_v14 }
 0x3a3   : > { %v756_v39 = vadd.f32 %v754_v24, %v735_v36 }
 0x3a6   : > { %v760_v4 = vpop.permute.xlu1 %759 }
 0x3a7   : > { %v762_v19 = vsel %vm761_vm3, %v758_v50, %v760_v4  ;;  %v763_v26 = vsel %vm761_vm3, %v760_v4, %v758_v50 }
 0x3a8   : > { %v768_v10 = vsel %vm572_vm5, %v762_v19, 0.0  ;;  %v769_v30 = vsel %vm599_vm2, %v763_v26, 0.0 }
 0x3a9   : > { %v774_v41 = vmul.f32 %v1915_v12, %v768_v10  ;;  %v775_v37 = vmul.f32 %v1915_v12, %v769_v30 }
 0x3ab   : > { %v776_v40 = vadd.f32 %v774_v41, %v755_v38  ;;  %v777_v20 = vadd.f32 %v775_v37, %v756_v39 }
 0x3ad   : > { %v784_v17 = vadd.f32 %v782_v42, %v776_v40  ;;  %v785_v43 = vadd.f32 %v782_v42, %v777_v20 }
 0x3af   : > { %v786_v44 = vmax.f32 %v784_v17, 0.0  ;;  %v787_v45 = vmax.f32 %v785_v43, 0.0 }
 0x3b1   : > { %v790_v46 = vrot.slane %v786_v44, 4  ;;  %v791_v47 = vrot.slane %v787_v45, 4 }
 0x3b3   : > { %v794_v7 = vsel %vm455_vm0, %v1869_v53, %v790_v46  ;;  %v795_v49 = vsel %vm455_vm0, %v1874_v55, %v791_v47 }
 0x3df   : > { %v1274_v12 = vpop.f32.mrb[4].mxu0 }
 0x3e0   : > { %v1279_v48 = vmul.f32 %v1274_v12, %v794_v7  ;;  %v1276_v50 = vpop.f32.mrb[5].mxu0 }
 0x3e1   : > { %v1280_v51 = vmul.f32 %v1276_v50, %v795_v49 }
 0x3e2   : > { %1281 = vst [vmem:[%s440_s28] sm:$0xff] %v1279_v48 }
 0x3e3   : > { %1282 = vst [vmem:[%s440_s28 + $0x8] sm:$0xff] %v1280_v51 }
 0x3e4 PF: > { %s23_s25 = sadd.s32 1, %s1610_s25  }
 0x3e5   : > { %p20_p4 = scmp.ge.s32.totalorder %s23_s25, 4  }
 0x3e7   :  { %22 = sbr.rel (!%p20_p4) target bundleno = 1 (0x1), region = 102 }

</bundles_post_ra>
